<compile_context>
chip_gen: v7x
topology: tpu7x:2x2x1
jax: 0.10.0
libtpu: 0.0.40
codegen_flags: <defaults>
</compile_context>

<pallas_src>
import math

import numpy as np

import jax
import jax.numpy as jnp
from jax import lax
from jax.experimental import pallas as pl
from jax.experimental.pallas import tpu as pltpu


# ----------------------- DCT weights (exact PyTorch logic) -------------------
def get_1d_dct(i, freq, L):
    result = math.cos(math.pi * freq * (i + 0.5) / L) / math.sqrt(L)
    if freq == 0:
        return result
    return result * math.sqrt(2)


def get_dct_weights(width, height, channel,
                    fidx_u=(0, 0, 6, 0, 0, 1, 1, 4, 5, 1, 3, 0, 0, 0, 2, 3),
                    fidx_v=(0, 1, 0, 5, 2, 0, 2, 0, 0, 6, 0, 4, 6, 3, 2, 5)):
    scale_ratio = width // 7
    fidx_u = [u * scale_ratio for u in fidx_u]
    fidx_v = [v * scale_ratio for v in fidx_v]
    w = np.zeros((1, channel, width, height), dtype=np.float32)
    c_part = channel // len(fidx_u)
    for i, (u_x, v_y) in enumerate(zip(fidx_u, fidx_v)):
        for t_x in range(width):
            for t_y in range(height):
                w[:, i * c_part:(i + 1) * c_part, t_x, t_y] = (
                    get_1d_dct(t_x, u_x, width) * get_1d_dct(t_y, v_y, height))
    return w


# ----------------------------- Pallas kernel ---------------------------------
def _fca_kernel(x_ref, dct_ref, w1_ref, w2_ref, o_ref):
    """Fused FcaLayer step for `nb` batch elements.

    x_ref   : (nb, C, HW) f32 — NCHW activation with spatial flattened; the
              lane axis HW is a multiple of 128 -> unmasked lane-dense I/O.
    dct_ref : (C, HW) f32 — DCT weights with the adaptive-avg-pool bin average
              already folded in (constant, layout plumbing done in wrapper).
    w1_ref  : (C, Cr) f32 — fc1.weight^T.     w2_ref : (Cr, C) f32 — fc2.weight^T.
    o_ref   : (nb, C, HW) f32.
    """
    x = x_ref[...]                                               # (nb, C, HW)

    # ---- squeeze: frequency-weighted global pooling -> (nb, C)
    y = jnp.sum(x * dct_ref[...], axis=2)

    # ---- excite: Linear -> ReLU -> Linear -> Sigmoid.
    # Tiny contractions (C=32, Cr=8): exact-f32 VPU/XLU reduce, no MXU launch.
    h = jnp.maximum(
        jnp.sum(y[:, :, None] * w1_ref[...][None, :, :], axis=1), 0.0)  # (nb, Cr)
    z = jnp.sum(h[:, :, None] * w2_ref[...][None, :, :], axis=1)        # (nb, C)
    s = 1.0 / (1.0 + jnp.exp(-z))                                       # (nb, C)

    # ---- channel re-scale (lane broadcast of s over HW); single HBM write.
    o_ref[...] = x * s[:, :, None]


# ----------------------------- wrapper ----------------------------------------
def fca_layer_forward(x_nchw, fc1_w, fc2_w, dct_cxy, *, resolution,
                      max_batch_block=8):
    """FcaLayer forward.  x_nchw: (N, C, H, W); fc1_w: (C//r, C); fc2_w: (C, C//r);
    dct_cxy: (C, resolution, resolution)."""
    N, C, H, W = x_nchw.shape
    Cr = fc1_w.shape[0]
    HW = H * W

    if H % resolution != 0 or W % resolution != 0:
        # TODO(synk): general (non-divisible) adaptive_avg_pool2d bins not implemented.
        raise NotImplementedError("adaptive_avg_pool2d with non-divisible bins")
    bh, bw = H // resolution, W // resolution

    # Fold the exactly-divisible adaptive_avg_pool2d into the DCT constant:
    # pool-then-weight == weight the full map with bin-repeated, bin-averaged
    # DCT weights.  Tiny constant -> pure layout plumbing, done once.
    dct_full = jnp.repeat(jnp.repeat(dct_cxy.astype(jnp.float32), bh, axis=1),
                          bw, axis=2) / float(bh * bw)
    dct_flat = dct_full.reshape(C, HW)

    w1t = jnp.transpose(fc1_w).astype(jnp.float32)                # (C, Cr)
    w2t = jnp.transpose(fc2_w).astype(jnp.float32)                # (Cr, C)
    x_flat = x_nchw.astype(jnp.float32).reshape(N, C, HW)

    # Several batch elements per grid step (amortize per-step overhead), but
    # capped so double-buffered in+out blocks stay far under the scoped-VMEM
    # default on every generation (v5e 16 MiB / v6e+v7x 32 MiB).
    nb = 1
    for d in range(1, min(N, max_batch_block) + 1):
        if N % d == 0 and d * C * HW * 4 <= (4 << 20):
            nb = d

    flops = N * (3 * C * HW + 4 * C * Cr + C)
    bytes_accessed = 2 * N * C * HW * 4 + C * HW * 4 + 2 * C * Cr * 4

    out_flat = pl.pallas_call(
        _fca_kernel,
        out_shape=jax.ShapeDtypeStruct((N, C, HW), jnp.float32),
        grid=(N // nb,),
        in_specs=[
            pl.BlockSpec((nb, C, HW), lambda i: (i, 0, 0)),
            pl.BlockSpec((C, HW), lambda i: (0, 0)),
            pl.BlockSpec((C, Cr), lambda i: (0, 0)),
            pl.BlockSpec((Cr, C), lambda i: (0, 0)),
        ],
        out_specs=pl.BlockSpec((nb, C, HW), lambda i: (i, 0, 0)),
        compiler_params=pltpu.CompilerParams(dimension_semantics=("parallel",)),
        cost_estimate=pl.CostEstimate(flops=int(flops), transcendentals=N * C,
                                      bytes_accessed=int(bytes_accessed)),
    )(x_flat, dct_flat, w1t, w2t)

    return out_flat.reshape(N, C, H, W)


# ----------------------------- pure-JAX reference -----------------------------
def fca_layer_reference(x, fc1_w, fc2_w, dct_cxy, *, resolution):
    N, C, H, W = x.shape
    bh, bw = H // resolution, W // resolution
    pooled = x.reshape(N, C, resolution, bh, resolution, bw).mean(axis=(3, 5))
    y = jnp.sum(pooled * dct_cxy[None, :, :, :], axis=(2, 3))
    h = jnp.maximum(jnp.dot(y, fc1_w.T, precision=lax.Precision.HIGHEST), 0.0)
    z = jnp.dot(h, fc2_w.T, precision=lax.Precision.HIGHEST)
    s = 1.0 / (1.0 + jnp.exp(-z))
    return x * s[:, :, None, None]


# ---------------------------------- main ---------------------------------------
if __name__ == "__main__":
    N, C = 2, 32
    H = W = 32
    resolution = 16        # adaptive_avg_pool2d target (bins of 2x2, divisible)
    reduction = 4

    key = jax.random.PRNGKey(0)
    k1, k2, k3 = jax.random.split(key, 3)
    x = jax.random.normal(k1, (N, C, H, W), jnp.float32)
    fc1_w = 0.3 * jax.random.normal(k2, (C // reduction, C), jnp.float32)
    fc2_w = 0.3 * jax.random.normal(k3, (C, C // reduction), jnp.float32)

    dct_np = get_dct_weights(resolution, resolution, C)        # (1, C, res, res)
    dct = jnp.asarray(dct_np[0])                               # (C, res, res)

    out = fca_layer_forward(x, fc1_w, fc2_w, dct, resolution=resolution)
    out = jax.block_until_ready(out)
    assert out.shape == (N, C, H, W), out.shape

    ref = fca_layer_reference(x, fc1_w, fc2_w, dct, resolution=resolution)
    err = float(jnp.max(jnp.abs(out - ref)))
    assert err < 1e-4, f"max abs err vs f32 reference {err}"

    print("KERNEL_OK")
</pallas_src>

<mosaic_0001>
module attributes {stable_mosaic.version = 11 : i64} {
  func.func @_fca_kernel(%arg0: i32, %arg1: memref<2x32x1024xf32, #tpu.memory_space<vmem>>, %arg2: memref<32x1024xf32, #tpu.memory_space<vmem>>, %arg3: memref<32x8xf32, #tpu.memory_space<vmem>>, %arg4: memref<8x32xf32, #tpu.memory_space<vmem>>, %arg5: memref<2x32x1024xf32, #tpu.memory_space<vmem>>) attributes {dimension_semantics = [#tpu.dimension_semantics<parallel>], iteration_bounds = array<i64: 1>, scalar_prefetch = 0 : i64, scratch_operands = 0 : i64, tpu.core_type = #tpu.core_type<tc>, window_params = [{transform_indices = @transform_0, window_bounds = array<i64: 2, 32, 1024>}, {pipeline_mode = #tpu.pipeline_mode<synchronous>, transform_indices = @transform_1, window_bounds = array<i64: 32, 1024>}, {pipeline_mode = #tpu.pipeline_mode<synchronous>, transform_indices = @transform_2, window_bounds = array<i64: 32, 8>}, {pipeline_mode = #tpu.pipeline_mode<synchronous>, transform_indices = @transform_3, window_bounds = array<i64: 8, 32>}, {transform_indices = @transform_4, window_bounds = array<i64: 2, 32, 1024>}]} {
    %c0 = arith.constant 0 : index
    %c0_0 = arith.constant 0 : index
    %c0_1 = arith.constant 0 : index
    %0 = vector.load %arg1[%c0, %c0_0, %c0_1] : memref<2x32x1024xf32, #tpu.memory_space<vmem>>, vector<2x32x1024xf32>
    %c0_2 = arith.constant 0 : index
    %c0_3 = arith.constant 0 : index
    %1 = vector.load %arg2[%c0_2, %c0_3] : memref<32x1024xf32, #tpu.memory_space<vmem>>, vector<32x1024xf32>
    %2 = vector.shape_cast %1 : vector<32x1024xf32> to vector<1x32x1024xf32>
    %3 = vector.broadcast %2 : vector<1x32x1024xf32> to vector<2x32x1024xf32>
    %4 = arith.mulf %0, %3 : vector<2x32x1024xf32>
    %cst = arith.constant dense<0.000000e+00> : vector<2x32xf32>
    %5 = vector.multi_reduction <add>, %4, %cst [2] : vector<2x32x1024xf32> to vector<2x32xf32>
    %6 = vector.shape_cast %5 : vector<2x32xf32> to vector<2x32x1xf32>
    %c0_4 = arith.constant 0 : index
    %c0_5 = arith.constant 0 : index
    %7 = vector.load %arg3[%c0_4, %c0_5] : memref<32x8xf32, #tpu.memory_space<vmem>>, vector<32x8xf32>
    %8 = vector.shape_cast %7 : vector<32x8xf32> to vector<1x32x8xf32>
    %9 = vector.broadcast %6 : vector<2x32x1xf32> to vector<2x32x8xf32>
    %10 = vector.broadcast %8 : vector<1x32x8xf32> to vector<2x32x8xf32>
    %11 = arith.mulf %9, %10 : vector<2x32x8xf32>
    %cst_6 = arith.constant dense<0.000000e+00> : vector<2x8xf32>
    %12 = vector.multi_reduction <add>, %11, %cst_6 [1] : vector<2x32x8xf32> to vector<2x8xf32>
    %cst_7 = arith.constant 0.000000e+00 : f32
    %13 = vector.broadcast %cst_7 : f32 to vector<2x8xf32>
    %14 = arith.maximumf %12, %13 : vector<2x8xf32>
    %15 = vector.shape_cast %14 : vector<2x8xf32> to vector<2x8x1xf32>
    %c0_8 = arith.constant 0 : index
    %c0_9 = arith.constant 0 : index
    %16 = vector.load %arg4[%c0_8, %c0_9] : memref<8x32xf32, #tpu.memory_space<vmem>>, vector<8x32xf32>
    %17 = vector.shape_cast %16 : vector<8x32xf32> to vector<1x8x32xf32>
    %18 = vector.broadcast %15 : vector<2x8x1xf32> to vector<2x8x32xf32>
    %19 = vector.broadcast %17 : vector<1x8x32xf32> to vector<2x8x32xf32>
    %20 = arith.mulf %18, %19 : vector<2x8x32xf32>
    %cst_10 = arith.constant dense<0.000000e+00> : vector<2x32xf32>
    %21 = vector.multi_reduction <add>, %20, %cst_10 [1] : vector<2x8x32xf32> to vector<2x32xf32>
    %cst_11 = arith.constant 0.000000e+00 : f32
    %22 = vector.broadcast %cst_11 : f32 to vector<2x32xf32>
    %23 = arith.subf %22, %21 : vector<2x32xf32>
    %24 = math.exp %23 : vector<2x32xf32>
    %cst_12 = arith.constant 1.000000e+00 : f32
    %25 = vector.broadcast %cst_12 : f32 to vector<2x32xf32>
    %26 = arith.addf %25, %24 : vector<2x32xf32>
    %cst_13 = arith.constant 1.000000e+00 : f32
    %27 = vector.broadcast %cst_13 : f32 to vector<2x32xf32>
    %28 = arith.divf %27, %26 : vector<2x32xf32>
    %29 = vector.shape_cast %28 : vector<2x32xf32> to vector<2x32x1xf32>
    %30 = vector.broadcast %29 : vector<2x32x1xf32> to vector<2x32x1024xf32>
    %31 = arith.mulf %0, %30 : vector<2x32x1024xf32>
    %c0_14 = arith.constant 0 : index
    %c0_15 = arith.constant 0 : index
    %c0_16 = arith.constant 0 : index
    %32 = vector.load %arg5[%c0_14, %c0_15, %c0_16] : memref<2x32x1024xf32, #tpu.memory_space<vmem>>, vector<2x32x1024xf32>
    tpu.vector_store %arg5[%c0_14, %c0_15, %c0_16], %31 {strides = array<i32>} : memref<2x32x1024xf32, #tpu.memory_space<vmem>>, vector<2x32x1024xf32>,
    return
  }
  func.func @transform_0(%arg0: i32) -> (i32, i32, i32) {
    %c0_i32 = arith.constant 0 : i32
    %c0_i32_0 = arith.constant 0 : i32
    %c0_i32_1 = arith.constant 0 : i32
    return %arg0, %c0_i32, %c0_i32_0 : i32, i32, i32
  }
  func.func @transform_1(%arg0: i32) -> (i32, i32) {
    %c0_i32 = arith.constant 0 : i32
    %c0_i32_0 = arith.constant 0 : i32
    %c0_i32_1 = arith.constant 0 : i32
    return %c0_i32, %c0_i32_0 : i32, i32
  }
  func.func @transform_2(%arg0: i32) -> (i32, i32) {
    %c0_i32 = arith.constant 0 : i32
    %c0_i32_0 = arith.constant 0 : i32
    %c0_i32_1 = arith.constant 0 : i32
    return %c0_i32, %c0_i32_0 : i32, i32
  }
  func.func @transform_3(%arg0: i32) -> (i32, i32) {
    %c0_i32 = arith.constant 0 : i32
    %c0_i32_0 = arith.constant 0 : i32
    %c0_i32_1 = arith.constant 0 : i32
    return %c0_i32, %c0_i32_0 : i32, i32
  }
  func.func @transform_4(%arg0: i32) -> (i32, i32, i32) {
    %c0_i32 = arith.constant 0 : i32
    %c0_i32_0 = arith.constant 0 : i32
    %c0_i32_1 = arith.constant 0 : i32
    return %arg0, %c0_i32, %c0_i32_0 : i32, i32, i32
  }
}

</mosaic_0001>

<bundles_post_ra>
// kernel: tpu_custom_call.1
= control target key start
LH: loop header
LB: loop body
LE: loop exit
PB: predicated region body
PF: predicated region fallthrough
CT: control target
= control target key end

     0   :  { %9 = vsyncpa [#allocation3], 0  ;;  %s970_s0 = inlined_call_operand.hbm [shape: f32[2,32,1024], index: 0, kind: input, shape index: {}]   ;;  %s971_s1 = inlined_call_operand.hbm [shape: f32[32,1024], index: 1, kind: input, shape index: {}]   ;;  %s972_s2 = inlined_call_operand.vmem [shape: f32[32,8], index: 2, kind: input, shape index: {}]   ;;  %s973_s3 = inlined_call_operand.vmem [shape: f32[8,32], index: 3, kind: input, shape index: {}]   ;;  %s974_s4 = inlined_call_operand.hbm [shape: f32[2,32,1024], index: 4, kind: output, shape index: {}]  }
   0x1   :  { %10 = vsyncpa [#allocation6], 0 }
   0x2   :  { %11 = vsyncpa [#allocation4], 0  ;;  %s616_s15 = smov [#allocation2]   ;;  %s544_s19 = scalar_lea.hbm %s970_s0, 8192 }
   0x3   :  { %s17_s16 = sshll.u32 %s616_s15, 4  ;;  %p545_p0 = scmp.ne.s32.totalorder %s970_s0, %s544_s19  ;;  %s18_s16 = int_to_ptr.vmem [resolvable:$true] %s17_s16 }
   0x4   :  { %p548_p1 = scmp.lt.u32.totalorder %s544_s19, %s970_s0 }
   0x6   :  { %p550_p2 = pnand %p548_p1, %p545_p0 }
   0x8   :  { %553 = shalt.err (!%p550_p2)
}
   0x9   :  { %s554_s24 = scalar_lea.vmem %s18_s16, 8192  ;;  %p559_p4 = scmp.lt.s32.totalorder %s18_s16, %s18_s16 }
   0xa   :  { %p555_p3 = scmp.ne.s32.totalorder %s18_s16, %s554_s24  ;;  %p560_p5 = scmp.lt.s32.totalorder %s554_s24, %s554_s24 }
   0xc   :  { %p561_p6 = por %p560_p5, %p559_p4 }
   0xe   :  { %p562_p7 = pnand %p561_p6, %p555_p3 }
  0x10   :  { %565 = shalt.err (!%p562_p7)
}
  0x11   :  { %s617_s25 = smov 1024   ;;  %s618_s26 = smov 64  }
  0x12   :  { %23 = dma.hbm_to_vmem [thread:$0]  %s970_s0, 8192, %s18_s16, [#allocation3], %s617_s25, %s617_s25, %s618_s26  }
  0x13   :  { %s619_s29 = smov [#allocation5]   ;;  %s566_s7 = scalar_lea.hbm %s971_s1, 4096 }
  0x14   :  { %s29_s30 = sshll.u32 %s619_s29, 4  ;;  %p567_p8 = scmp.ne.s32.totalorder %s971_s1, %s566_s7  ;;  %s30_s30 = int_to_ptr.vmem [resolvable:$true] %s29_s30 }
  0x15   :  { %p570_p9 = scmp.lt.u32.totalorder %s566_s7, %s971_s1 }
  0x17   :  { %p572_p10 = pnand %p570_p9, %p567_p8 }
  0x19   :  { %575 = shalt.err (!%p572_p10)
}
  0x1a   :  { %s576_s12 = scalar_lea.vmem %s30_s30, 4096  ;;  %p581_p12 = scmp.lt.s32.totalorder %s30_s30, %s30_s30 }
  0x1b   :  { %p577_p11 = scmp.ne.s32.totalorder %s30_s30, %s576_s12  ;;  %p582_p13 = scmp.lt.s32.totalorder %s576_s12, %s576_s12 }
  0x1d   :  { %p583_p0 = por %p582_p13, %p581_p12 }
  0x1f   :  { %p584_p1 = pnand %p583_p0, %p577_p11 }
  0x21   :  { %587 = shalt.err (!%p584_p1)
}
  0x22   :  { %35 = dma.hbm_to_vmem [thread:$0]  %s971_s1, 4096, %s30_s30, [#allocation6], %s617_s25, %s617_s25, %s618_s26  }
  0x23   :  { %610 = dma.done.wait [#allocation3], 8192  }
  0x24   :  { %611 = vsyncadd [#allocation3], 4294959104 }
  0x25   :  { %612 = dma.done.wait [#allocation6], 4096  }
  0x26   :  { %613 = vsyncadd [#allocation6], 4294963200  ;;  %v676_v0 = vld [vmem:[#allocation2 + $0x100] sm:$0xff]  ;;  %v678_v1 = vld [vmem:[#allocation2 + $0x108] sm:$0xff]  ;;  %vm290_vm0 = vcmask 64512   ;;  %vm328_vm1 = vcmask 261120  }
  0x27   :  { %v680_v2 = vld [vmem:[#allocation2 + $0x110] sm:$0xff]  ;;  %v682_v3 = vld [vmem:[#allocation2 + $0x118] sm:$0xff]  ;;  %v110_v4 = vld [vmem:[#allocation5] sm:$0xff] }
  0x28   :  { %v111_v5 = vld [vmem:[#allocation5 + $0x8] sm:$0xff]  ;;  %v112_v6 = vld [vmem:[#allocation5 + $0x10] sm:$0xff]  ;;  %v113_v7 = vld [vmem:[#allocation5 + $0x18] sm:$0xff]  ;;  %v174_v8 = vmul.f32 %v110_v4, %v676_v0 }
  0x29   :  { %v685_v9 = vld [vmem:[#allocation2 + $0x120] sm:$0xff]  ;;  %v175_v10 = vmul.f32 %v111_v5, %v678_v1  ;;  %v176_v11 = vmul.f32 %v112_v6, %v680_v2  ;;  %v691_v14 = vld [vmem:[#allocation2 + $0x8] sm:$0xff]  ;;  %v177_v15 = vmul.f32 %v113_v7, %v682_v3  ;;  %v694_v17 = vld [vmem:[#allocation2 + $0x10] sm:$0xff] }
  0x2a   :  { %v114_v12 = vld [vmem:[#allocation5 + $0x20] sm:$0xff]  ;;  %v696_v18 = vld [vmem:[#allocation2 + $0x18] sm:$0xff]  ;;  %v143_v20 = vmul.f32 %v111_v5, %v691_v14  ;;  %v700_v21 = vld [vmem:[#allocation2 + $0x128] sm:$0xff]  ;;  %v144_v24 = vmul.f32 %v112_v6, %v694_v17 }
  0x2b   :  { %v689_v13 = vld [vmem:[#allocation2] sm:$0xff]  ;;  %v242_v16 = vadd.f32 %v175_v10, %v174_v8  ;;  %v702_v22 = vld [vmem:[#allocation2 + $0x130] sm:$0xff]  ;;  %v115_v23 = vld [vmem:[#allocation5 + $0x28] sm:$0xff]  ;;  %v178_v27 = vmul.f32 %v114_v12, %v685_v9  ;;  %v145_v32 = vmul.f32 %v113_v7, %v696_v18 }
  0x2c   :  { %v142_v19 = vmul.f32 %v110_v4, %v689_v13  ;;  %v705_v25 = vld [vmem:[#allocation2 + $0x138] sm:$0xff]  ;;  %v116_v26 = vld [vmem:[#allocation5 + $0x30] sm:$0xff]  ;;  %v708_v29 = vld [vmem:[#allocation2 + $0x20] sm:$0xff]  ;;  %v179_v36 = vmul.f32 %v115_v23, %v700_v21 }
  0x2d   :  { %v243_v28 = vadd.f32 %v242_v16, %v176_v11  ;;  %v710_v30 = vld [vmem:[#allocation2 + $0x140] sm:$0xff]  ;;  %v117_v31 = vld [vmem:[#allocation5 + $0x38] sm:$0xff]  ;;  %v713_v34 = vld [vmem:[#allocation2 + $0x148] sm:$0xff]  ;;  %v146_v41 = vmul.f32 %v114_v12, %v708_v29  ;;  %v180_v47 = vmul.f32 %v116_v26, %v702_v22 }
  0x2e   :  { %999 = vst [vmem:[#allocation11_spill] sm:$0xff] %v710_v30  ;;  %v206_v33 = vadd.f32 %v143_v20, %v142_v19  ;;  %1000 = vst [vmem:[#allocation12_spill] sm:$0xff] %v713_v34  ;;  %v715_v35 = vld [vmem:[#allocation2 + $0x150] sm:$0xff]  ;;  %v718_v38 = vld [vmem:[#allocation2 + $0x28] sm:$0xff]  ;;  %v181_v53 = vmul.f32 %v117_v31, %v705_v25 }
  0x2f   :  { %1001 = vst [vmem:[#allocation13_spill] sm:$0xff] %v715_v35  ;;  %v244_v37 = vadd.f32 %v243_v28, %v177_v15  ;;  %v720_v39 = vld [vmem:[#allocation2 + $0x158] sm:$0xff]  ;;  %v118_v40 = vld [vmem:[#allocation5 + $0x40] sm:$0xff]  ;;  %v119_v43 = vld [vmem:[#allocation5 + $0x48] sm:$0xff]  ;;  %v147_v54 = vmul.f32 %v115_v23, %v718_v38 }
  0x30   :  { %1002 = vst [vmem:[#allocation14_spill] sm:$0xff] %v720_v39  ;;  %v207_v42 = vadd.f32 %v206_v33, %v144_v24  ;;  %v120_v44 = vld [vmem:[#allocation5 + $0x50] sm:$0xff]  ;;  %v121_v45 = vld [vmem:[#allocation5 + $0x58] sm:$0xff]  ;;  %v182_v46 = vmul.f32 %v118_v40, %v710_v30  ;;  %v727_v50 = vld [vmem:[#allocation2 + $0x160] sm:$0xff]  ;;  %v183_v51 = vmul.f32 %v119_v43, %v713_v34 }
  0x31   :  { %v245_v48 = vadd.f32 %v244_v37, %v178_v27  ;;  %v725_v49 = vld [vmem:[#allocation2 + $0x30] sm:$0xff]  ;;  %1003 = vst [vmem:[#allocation15_spill] sm:$0xff] %v727_v50  ;;  %v184_v52 = vmul.f32 %v120_v44, %v715_v35  ;;  %v122_v56 = vld [vmem:[#allocation5 + $0x60] sm:$0xff]  ;;  %v735_v58 = vld [vmem:[#allocation2 + $0x48] sm:$0xff]  ;;  %v185_v61 = vmul.f32 %v121_v45, %v720_v39 }
  0x32   :  { %v208_v55 = vadd.f32 %v207_v42, %v145_v32  ;;  %v733_v57 = vld [vmem:[#allocation2 + $0x40] sm:$0xff]  ;;  %v737_v60 = vld [vmem:[#allocation2 + $0x38] sm:$0xff]  ;;  %v251_v62 = vadd.f32 %v183_v51, %v182_v46  ;;  %v740_v63 = vld [vmem:[#allocation2 + $0x50] sm:$0xff]  ;;  %v148_v6 = vmul.f32 %v116_v26, %v725_v49  ;;  %v151_v12 = vmul.f32 %v119_v43, %v735_v58 }
  0x33   :  { %v246_v59 = vadd.f32 %v245_v48, %v179_v36  ;;  %v742_v4 = vld [vmem:[#allocation2 + $0x58] sm:$0xff]  ;;  %v150_v5 = vmul.f32 %v118_v40, %v733_v57  ;;  %v746_v8 = vld [vmem:[#allocation2 + $0x168] sm:$0xff]  ;;  %v748_v10 = vld [vmem:[#allocation2 + $0x170] sm:$0xff]  ;;  %v152_v15 = vmul.f32 %v120_v44, %v740_v63  ;;  %v186_v20 = vmul.f32 %v122_v56, %v727_v50 }
  0x34   :  { %v209_v7 = vadd.f32 %v208_v55, %v146_v41  ;;  %1004 = vst [vmem:[#allocation16_spill] sm:$0xff] %v746_v8  ;;  %1005 = vst [vmem:[#allocation17_spill] sm:$0xff] %v748_v10  ;;  %v123_v11 = vld [vmem:[#allocation5 + $0x68] sm:$0xff]  ;;  %v124_v19 = vld [vmem:[#allocation5 + $0x70] sm:$0xff]  ;;  %v252_v23 = vadd.f32 %v251_v62, %v184_v52  ;;  %v149_v26 = vmul.f32 %v117_v31, %v737_v60 }
  0x35   :  { %v247_v16 = vadd.f32 %v246_v59, %v180_v47  ;;  %v753_v24 = vld [vmem:[#allocation2 + $0x60] sm:$0xff]  ;;  %v758_v32 = vld [vmem:[#allocation2 + $0x178] sm:$0xff]  ;;  %v153_v36 = vmul.f32 %v121_v45, %v742_v4  ;;  %v215_v37 = vadd.f32 %v151_v12, %v150_v5  ;;  %v761_v40 = vld [vmem:[#allocation2 + $0x188] sm:$0xff]  ;;  %v187_v43 = vmul.f32 %v123_v11, %v746_v8 }
  0x36   :  { %v755_v27 = vld [vmem:[#allocation2 + $0x180] sm:$0xff]  ;;  %v210_v28 = vadd.f32 %v209_v7, %v147_v54  ;;  %1007 = vst [vmem:[#allocation19_spill] sm:$0xff] %v758_v32  ;;  %v125_v33 = vld [vmem:[#allocation5 + $0x78] sm:$0xff]  ;;  %1008 = vst [vmem:[#allocation20_spill] sm:$0xff] %v761_v40  ;;  %v253_v44 = vadd.f32 %v252_v23, %v185_v61  ;;  %v154_v51 = vmul.f32 %v122_v56, %v753_v24 }
  0x37   :  { %1006 = vst [vmem:[#allocation18_spill] sm:$0xff] %v755_v27  ;;  %v763_v41 = vld [vmem:[#allocation2 + $0x190] sm:$0xff]  ;;  %v248_v42 = vadd.f32 %v247_v16, %v181_v53  ;;  %v766_v46 = vld [vmem:[#allocation2 + $0x68] sm:$0xff]  ;;  %v768_v47 = vld [vmem:[#allocation2 + $0x198] sm:$0xff]  ;;  %v216_v52 = vadd.f32 %v215_v37, %v152_v15  ;;  %v188_v53 = vmul.f32 %v124_v19, %v748_v10 }
  0x38   :  { %1009 = vst [vmem:[#allocation21_spill] sm:$0xff] %v763_v41  ;;  %1010 = vst [vmem:[#allocation22_spill] sm:$0xff] %v768_v47  ;;  %v126_v31 = vld [vmem:[#allocation5 + $0x80] sm:$0xff]  ;;  %v211_v48 = vadd.f32 %v210_v28, %v148_v6  ;;  %v127_v54 = vld [vmem:[#allocation5 + $0x88] sm:$0xff]  ;;  %v254_v62 = vadd.f32 %v253_v44, %v186_v20  ;;  %v155_v15 = vmul.f32 %v123_v11, %v766_v46 }
  0x39   :  { %v128_v45 = vld [vmem:[#allocation5 + $0x90] sm:$0xff]  ;;  %v129_v55 = vld [vmem:[#allocation5 + $0x98] sm:$0xff]  ;;  %v190_v59 = vmul.f32 %v126_v31, %v755_v27  ;;  %249 = vadd.xlane.f32.xlu1 %v248_v42  ;;  %v777_v7 = vld [vmem:[#allocation2 + $0x1a0] sm:$0xff]  ;;  %v191_v6 = vmul.f32 %v127_v54, %v761_v40  ;;  %v217_v16 = vadd.f32 %v216_v52, %v153_v36  ;;  %v189_v20 = vmul.f32 %v125_v33, %v758_v32 }
  0x3a   :  { %v773_v5 = vld [vmem:[#allocation2 + $0x70] sm:$0xff]  ;;  %v775_v61 = vld [vmem:[#allocation2 + $0x78] sm:$0xff]  ;;  %1013 = vst [vmem:[#allocation25_spill] sm:$0xff] %v777_v7  ;;  %v192_v56 = vmul.f32 %v128_v45, %v763_v41  ;;  %v212_v12 = vadd.f32 %v211_v48, %v149_v26  ;;  %v130_v23 = vld [vmem:[#allocation5 + $0xa0] sm:$0xff]  ;;  %v255_v42 = vadd.f32 %v254_v62, %v187_v43  ;;  %v193_v8 = vmul.f32 %v129_v55, %v768_v47 }
  0x3b   :  { %1011 = vst [vmem:[#allocation23_spill] sm:$0xff] %v773_v5  ;;  %1012 = vst [vmem:[#allocation24_spill] sm:$0xff] %v775_v61  ;;  %v782_v28 = vld [vmem:[#allocation2 + $0x80] sm:$0xff]  ;;  %v784_v37 = vld [vmem:[#allocation2 + $0x88] sm:$0xff]  ;;  %v260_v50 = vadd.f32 %v191_v6, %v190_v59  ;;  %v156_v11 = vmul.f32 %v124_v19, %v773_v5  ;;  %v218_v26 = vadd.f32 %v217_v16, %v154_v51 }
  0x3c   :  { %v787_v44 = vld [vmem:[#allocation2 + $0x1a8] sm:$0xff]  ;;  %v790_v39 = vld [vmem:[#allocation2 + $0x90] sm:$0xff]  ;;  %213 = vadd.xlane.f32.xlu0 %v212_v12  ;;  %v793_v36 = vld [vmem:[#allocation2 + $0x98] sm:$0xff]  ;;  %v158_v48 = vmul.f32 %v126_v31, %v782_v28  ;;  %v159_v52 = vmul.f32 %v127_v54, %v784_v37  ;;  %v256_v32 = vadd.f32 %v255_v42, %v188_v53  ;;  %v194_v35 = vmul.f32 %v130_v23, %v777_v7 }
  0x3d   :  { %1014 = vst [vmem:[#allocation26_spill] sm:$0xff] %v787_v44  ;;  %v131_v10 = vld [vmem:[#allocation5 + $0xa8] sm:$0xff]  ;;  %v797_v43 = vld [vmem:[#allocation2 + $0x1b0] sm:$0xff]  ;;  %v261_v34 = vadd.f32 %v260_v50, %v192_v56  ;;  %v160_v59 = vmul.f32 %v128_v45, %v790_v39  ;;  %v801_v6 = vld [vmem:[#allocation2 + $0x1c0] sm:$0xff]  ;;  %v157_v19 = vmul.f32 %v125_v33, %v775_v61  ;;  %v219_v51 = vadd.f32 %v218_v26, %v155_v15 }
  0x3e   :  { %1015 = vst [vmem:[#allocation27_spill] sm:$0xff] %v797_v43  ;;  %v132_v62 = vld [vmem:[#allocation5 + $0xb0] sm:$0xff]  ;;  %1016 = vst [vmem:[#allocation28_spill] sm:$0xff] %v801_v6  ;;  %v804_v12 = vld [vmem:[#allocation2 + $0x1b8] sm:$0xff]  ;;  %v195_v31 = vmul.f32 %v131_v10, %v787_v44  ;;  %v257_v53 = vadd.f32 %v256_v32, %v189_v20  ;;  %v161_v50 = vmul.f32 %v129_v55, %v793_v36 }
  0x3f   :  { %1017 = vst [vmem:[#allocation29_spill] sm:$0xff] %v804_v12  ;;  %v807_v16 = vld [vmem:[#allocation2 + $0xa0] sm:$0xff]  ;;  %v809_v54 = vld [vmem:[#allocation2 + $0x1c8] sm:$0xff]  ;;  %v133_v42 = vld [vmem:[#allocation5 + $0xb8] sm:$0xff]  ;;  %v262_v30 = vadd.f32 %v261_v34, %v193_v8  ;;  %v224_v56 = vadd.f32 %v159_v52, %v158_v48  ;;  %v220_v47 = vadd.f32 %v219_v51, %v156_v11  ;;  %v196_v33 = vmul.f32 %v132_v62, %v797_v43 }
  0x40   :  { %1018 = vst [vmem:[#allocation30_spill] sm:$0xff] %v809_v54  ;;  %v812_v45 = vld [vmem:[#allocation2 + $0x1d0] sm:$0xff]  ;;  %v134_v7 = vld [vmem:[#allocation5 + $0xc0] sm:$0xff]  ;;  %v815_v15 = vld [vmem:[#allocation2 + $0xa8] sm:$0xff]  ;;  %258 = vadd.xlane.f32.xlu1 %v257_v53  ;;  %v162_v34 = vmul.f32 %v130_v23, %v807_v16 }
  0x41   :  { %1019 = vst [vmem:[#allocation31_spill] sm:$0xff] %v812_v45  ;;  %v135_v26 = vld [vmem:[#allocation5 + $0xc8] sm:$0xff]  ;;  %v136_v44 = vld [vmem:[#allocation5 + $0xd0] sm:$0xff]  ;;  %v198_v41 = vmul.f32 %v134_v7, %v801_v6  ;;  %v263_v40 = vadd.f32 %v262_v30, %v194_v35  ;;  %v225_v8 = vadd.f32 %v224_v56, %v160_v59  ;;  %v821_v55 = vld [vmem:[#allocation2 + $0x1d8] sm:$0xff]  ;;  %v221_v48 = vadd.f32 %v220_v47, %v157_v19 }
  0x42   :  { %v818_v32 = vld [vmem:[#allocation2 + $0xb0] sm:$0xff]  ;;  %1020 = vst [vmem:[#allocation32_spill] sm:$0xff] %v821_v55  ;;  %v137_v20 = vld [vmem:[#allocation5 + $0xd8] sm:$0xff]  ;;  %v199_v11 = vmul.f32 %v135_v26, %v809_v54  ;;  %v200_v51 = vmul.f32 %v136_v44, %v812_v45  ;;  %v827_v43 = vld [vmem:[#allocation2 + $0xc0] sm:$0xff]  ;;  %v197_v30 = vmul.f32 %v133_v42, %v804_v12  ;;  %v163_v23 = vmul.f32 %v131_v10, %v815_v15 }
  0x43   :  { %v824_v52 = vld [vmem:[#allocation2 + $0xb8] sm:$0xff]  ;;  %1021 = vst [vmem:[#allocation33_spill] sm:$0xff] %v827_v43  ;;  %v829_v6 = vld [vmem:[#allocation2 + $0xc8] sm:$0xff]  ;;  %v264_v35 = vadd.f32 %v263_v40, %v195_v31  ;;  %v226_v59 = vadd.f32 %v225_v8, %v161_v50  ;;  %v833_v53 = vld [vmem:[#allocation2 + $0x1e0] sm:$0xff]  ;;  %222 = vadd.xlane.f32.xlu0 %v221_v48  ;;  %v201_v47 = vmul.f32 %v137_v20, %v821_v55 }
  0x44   :  { %v138_v56 = vld [vmem:[#allocation5 + $0xe0] sm:$0xff]  ;;  %v835_v27 = vld [vmem:[#allocation2 + $0xd0] sm:$0xff]  ;;  %v269_v19 = vadd.f32 %v199_v11, %v198_v41  ;;  %v838_v45 = vld [vmem:[#allocation2 + $0xd8] sm:$0xff]  ;;  %v166_v54 = vmul.f32 %v134_v7, %v827_v43  ;;  %v167_v61 = vmul.f32 %v135_v26, %v829_v6  ;;  %v164_v40 = vmul.f32 %v132_v62, %v818_v32 }
  0x45   :  { %v265_v12 = vadd.f32 %v264_v35, %v196_v33  ;;  %v227_v10 = vadd.f32 %v226_v59, %v162_v34  ;;  %v843_v31 = vld [vmem:[#allocation2 + $0x1e8] sm:$0xff]  ;;  %v168_v8 = vmul.f32 %v136_v44, %v835_v27  ;;  %v165_v48 = vmul.f32 %v133_v42, %v824_v52  ;;  %v848_v11 = vld [vmem:[#allocation2 + $0xe0] sm:$0xff]  ;;  %v850_v43 = vld [vmem:[#allocation2 + $0x1f0] sm:$0xff] }
  0x46   :  { %v139_v50 = vld [vmem:[#allocation5 + $0xe8] sm:$0xff]  ;;  %v202_v55 = vmul.f32 %v138_v56, %v833_v53  ;;  %v270_v41 = vadd.f32 %v269_v19, %v200_v51  ;;  %v140_v33 = vld [vmem:[#allocation5 + $0xf0] sm:$0xff]  ;;  %v169_v62 = vmul.f32 %v137_v20, %v838_v45  ;;  %v233_v26 = vadd.f32 %v167_v61, %v166_v54  ;;  %v856_v42 = vld [vmem:[#allocation2 + $0x1f8] sm:$0xff] }
  0x47   :  { %v266_v5 = vadd.f32 %v265_v12, %v197_v30  ;;  %v228_v7 = vadd.f32 %v227_v10, %v163_v23  ;;  %v203_v34 = vmul.f32 %v139_v50, %v843_v31  ;;  %v854_v59 = vld [vmem:[#allocation2 + $0xe8] sm:$0xff]  ;;  %1022 = vst [vmem:[#allocation34_spill] sm:$0xff] %v856_v42  ;;  %v141_v51 = vld [vmem:[#allocation5 + $0xf8] sm:$0xff]  ;;  %v170_v19 = vmul.f32 %v138_v56, %v848_v11  ;;  %v860_v10 = vld [vmem:[#allocation2 + $0xf0] sm:$0xff] }
  0x48   :  { %v271_v35 = vadd.f32 %v270_v41, %v201_v47  ;;  %v234_v12 = vadd.f32 %v233_v26, %v168_v8  ;;  %v204_v30 = vmul.f32 %v140_v33, %v850_v43  ;;  %v171_v61 = vmul.f32 %v139_v50, %v854_v59 }
  0x49   :  { %267 = vadd.xlane.f32.xlu1 %v266_v5  ;;  %v229_v44 = vadd.f32 %v228_v7, %v164_v40  ;;  %v205_v47 = vmul.f32 %v141_v51, %v856_v42  ;;  %v864_v5 = vld [vmem:[#allocation2 + $0xf8] sm:$0xff]  ;;  %v172_v40 = vmul.f32 %v140_v33, %v860_v10  ;;  %v279_v33 = vld [vmem:[%s972_s2 + $0x8] sm:$0xff] }
  0x4a   :  { %v272_v23 = vadd.f32 %v271_v35, %v202_v55  ;;  %v235_v54 = vadd.f32 %v234_v12, %v169_v62  ;;  %v173_v8 = vmul.f32 %v141_v51, %v864_v5 }
  0x4b   :  { %v230_v20 = vadd.f32 %v229_v44, %v165_v48 }
  0x4c   :  { %v273_v41 = vadd.f32 %v272_v23, %v203_v34  ;;  %v236_v7 = vadd.f32 %v235_v54, %v170_v19  ;;  %v278_v34 = vld [vmem:[%s972_s2] sm:$0xff] }
  0x4d   :  { %231 = vadd.xlane.f32.xlu0 %v230_v20 }
  0x4e   :  { %v274_v56 = vadd.f32 %v273_v41, %v204_v30  ;;  %v237_v26 = vadd.f32 %v236_v7, %v171_v61  ;;  %v280_v30 = vld [vmem:[%s972_s2 + $0x10] sm:$0xff] }
  0x50   :  { %v275_v55 = vadd.f32 %v274_v56, %v205_v47  ;;  %v238_v35 = vadd.f32 %v237_v26, %v172_v40  ;;  %v281_v26 = vld [vmem:[%s972_s2 + $0x18] sm:$0xff] }
  0x52   :  { %276 = vadd.xlane.f32.xlu1 %v275_v55  ;;  %v239_v48 = vadd.f32 %v238_v35, %v173_v8 }
  0x54   :  { %240 = vadd.xlane.f32.xlu0 %v239_v48 }
  0xc6   :  { %v250_v50 = vpop.xlane.xlu1 %249 }
  0xc7   :  { %v286_v19 = vmul.f32 %v278_v34, %v250_v50 }
  0xc9   :  { %v214_v62 = vpop.xlane.xlu0 %213  ;;  %v304_v20 = vsel %vm290_vm0, %v286_v19, 0.0 }
  0xca   :  { %v282_v56 = vmul.f32 %v278_v34, %v214_v62 }
  0xcd   :  { %v259_v44 = vpop.xlane.xlu1 %258 }
  0xce   :  { %v287_v12 = vmul.f32 %v279_v33, %v259_v44  ;;  %v291_v44 = vsel %vm290_vm0, %v282_v56, 0.0 }
  0xd0   :  { %v223_v51 = vpop.xlane.xlu0 %222  ;;  %v305_v61 = vsel %vm290_vm0, %v287_v12, 0.0 }
  0xd1   :  { %v306_v41 = vadd.f32 %v305_v61, %v304_v20  ;;  %v283_v40 = vmul.f32 %v279_v33, %v223_v51 }
  0xd3   :  { %v292_v55 = vsel %vm290_vm0, %v283_v40, 0.0 }
  0xd4   :  { %v293_v12 = vadd.f32 %v292_v55, %v291_v44 }
  0xd6   :  { %v268_v23 = vpop.xlane.xlu1 %267 }
  0xd7   :  { %v288_v54 = vmul.f32 %v280_v30, %v268_v23 }
  0xd9   :  { %v307_v7 = vsel %vm290_vm0, %v288_v54, 0.0 }
  0xda   :  { %v232_v47 = vpop.xlane.xlu0 %231  ;;  %v308_v35 = vadd.f32 %v307_v7, %v306_v41 }
  0xdb   :  { %v284_v8 = vmul.f32 %v280_v30, %v232_v47 }
  0xdd   :  { %v294_v19 = vsel %vm290_vm0, %v284_v8, 0.0 }
  0xde   :  { %v295_v34 = vadd.f32 %v294_v19, %v293_v12 }
  0xdf   :  { %v277_v48 = vpop.xlane.xlu1 %276 }
  0xe0   :  { %v289_v50 = vmul.f32 %v281_v26, %v277_v48 }
  0xe1   :  { %v241_v51 = vpop.xlane.xlu0 %240 }
  0xe2   :  { %v309_v33 = vsel %vm290_vm0, %v289_v50, 0.0  ;;  %v285_v62 = vmul.f32 %v281_v26, %v241_v51  ;;  %v325_v26 = vld [vmem:[%s973_s3] sm:$0xff]  ;;  %s620_s3 = smov [#allocation7]  }
  0xe3   :  { %v310_v23 = vadd.f32 %v309_v33, %v308_v35  ;;  %s518_s22 = sshll.u32 %s620_s3, 4  ;;  %s519_s22 = int_to_ptr.vmem [resolvable:$true] %s518_s22 }
  0xe4   :  { %v296_v20 = vsel %vm290_vm0, %v285_v62, 0.0  ;;  %s588_s23 = scalar_lea.vmem %s519_s22, 8192  ;;  %p593_p3 = scmp.lt.s32.totalorder %s519_s22, %s519_s22 }
  0xe5   :  { %v311_v30 = vrot.slane %v310_v23, 4  ;;  %v297_v61 = vadd.f32 %v296_v20, %v295_v34  ;;  %p589_p2 = scmp.ne.s32.totalorder %s519_s22, %s588_s23  ;;  %p594_p4 = scmp.lt.s32.totalorder %s588_s23, %s588_s23 }
  0xe7   :  { %v312_v54 = vadd.f32 %v311_v30, %v310_v23  ;;  %v298_v47 = vrot.slane %v297_v61, 4  ;;  %p595_p5 = por %p594_p4, %p593_p3 }
  0xe9   :  { %v313_v41 = vrot.slane %v312_v54, 2  ;;  %v299_v40 = vadd.f32 %v298_v47, %v297_v61  ;;  %p596_p6 = pnand %p595_p5, %p589_p2 }
  0xeb   :  { %v314_v7 = vadd.f32 %v313_v41, %v312_v54  ;;  %v300_v48 = vrot.slane %v299_v40, 2 }
  0xed   :  { %v315_v56 = vrot.slane %v314_v7, 1  ;;  %v301_v42 = vadd.f32 %v300_v48, %v299_v40 }
  0xef   :  { %v316_v8 = vadd.f32 %v315_v56, %v314_v7  ;;  %v302_v55 = vrot.slane %v301_v42, 1 }
  0xf1   :  { %v318_v44 = vmax.f32 %v316_v8, 0.0  ;;  %v303_v50 = vadd.f32 %v302_v55, %v301_v42 }
  0xf3   :  { %323 = vbcast.lane.b32.xlu1 %v318_v44, 256  ;;  %v317_v35 = vmax.f32 %v303_v50, 0.0 }
  0xf5   :  { %320 = vbcast.lane.b32.xlu0 %v317_v35, 256 }
 0x165   :  { %v324_v19 = vpop.permute.xlu1 %323 }
 0x166   :  { %v327_v12 = vmul.f32 %v325_v26, %v324_v19 }
 0x167   :  { %v321_v51 = vpop.permute.xlu0 %320 }
 0x168   :  { %v336_v33 = vsel %vm328_vm1, %v327_v12, 0.0  ;;  %v326_v62 = vmul.f32 %v325_v26, %v321_v51 }
 0x169   :  { %v337_v23 = vrot.slane %v336_v33, 4 }
 0x16a   :  { %v329_v30 = vsel %vm328_vm1, %v326_v62, 0.0 }
 0x16b   :  { %v338_v34 = vadd.f32 %v337_v23, %v336_v33  ;;  %v330_v20 = vrot.slane %v329_v30, 4 }
 0x16d   :  { %v339_v61 = vrot.slane %v338_v34, 2  ;;  %v331_v54 = vadd.f32 %v330_v20, %v329_v30 }
 0x16f   :  { %v340_v42 = vadd.f32 %v339_v61, %v338_v34  ;;  %v332_v47 = vrot.slane %v331_v54, 2 }
 0x171   :  { %v341_v41 = vrot.slane %v340_v42, 1  ;;  %v333_v40 = vadd.f32 %v332_v47, %v331_v54 }
 0x173   :  { %v342_v7 = vadd.f32 %v341_v41, %v340_v42  ;;  %v334_v48 = vrot.slane %v333_v40, 1 }
 0x175   :  { %v344_v56 = vsub.f32 0.0, %v342_v7  ;;  %v335_v8 = vadd.f32 %v334_v48, %v333_v40  ;;  %v1024_v48 = vld [vmem:[#allocation24_spill] sm:$0xff] }
 0x177   :  { %v347_v55 = vmul.f32 1.442695, %v344_v56  ;;  %v343_v44 = vsub.f32 0.0, %v335_v8 }
 0x179   :  { %v345_v50 = vmul.f32 1.442695, %v343_v44  ;;  %536 = vpow2.f32 %v347_v55  ;;  %v1027_v44 = vld [vmem:[#allocation21_spill] sm:$0xff] }
 0x17b   :  { %538 = vpow2.f32 %v345_v50 }
 0x183   :  { %v537_v35 = vpop.eup %536 }
 0x184   :  { %v350_v12 = vadd.f32 1.0, %v537_v35  ;;  %v1028_v35 = vld [vmem:[#allocation22_spill] sm:$0xff] }
 0x185   :  { %v539_v26 = vpop.eup %538 }
 0x186   :  { %v349_v19 = vadd.f32 1.0, %v539_v26 }
 0x188   :  { %540 = vrcp.f32 %v349_v19  ;;  %v1030_v19 = vld [vmem:[#allocation26_spill] sm:$0xff] }
 0x189   :  { %542 = vrcp.f32 %v350_v12 }
 0x192   :  { %v541_v33 = vpop.eup %540 }
 0x193   :  { %364 = vbcast.lane.b32.xlu0 %v541_v33, 272  ;;  %356 = vbcast.lane.b32.xlu1 %v541_v33, 256  ;;  %v543_v51 = vpop.eup %542 }
 0x197   :  { %371 = vbcast.lane.b32.xlu0 %v543_v51, 256  ;;  %360 = vbcast.lane.b32.xlu1 %v541_v33, 264 }
 0x19b   :  { %379 = vbcast.lane.b32.xlu0 %v543_v51, 272  ;;  %368 = vbcast.lane.b32.xlu1 %v541_v33, 280  ;;  %v1031_v33 = vld [vmem:[#allocation27_spill] sm:$0xff] }
 0x19f   :  { %375 = vbcast.lane.b32.xlu1 %v543_v51, 264 }
 0x1a3   :  { %383 = vbcast.lane.b32.xlu1 %v543_v51, 280 }
 0x205   :  { %v365_v23 = vpop.permute.xlu0 %364  ;;  %v357_v62 = vpop.permute.xlu1 %356 }
 0x206   :  { %v401_v34 = vmul.f32 %v365_v23, %v782_v28  ;;  %v402_v30 = vmul.f32 %v365_v23, %v784_v37  ;;  %v403_v20 = vmul.f32 %v365_v23, %v790_v39  ;;  %v404_v61 = vmul.f32 %v365_v23, %v793_v36 }
 0x207   :  { %v405_v54 = vmul.f32 %v365_v23, %v807_v16  ;;  %v406_v42 = vmul.f32 %v365_v23, %v815_v15  ;;  %v407_v47 = vmul.f32 %v365_v23, %v818_v32  ;;  %v408_v41 = vmul.f32 %v365_v23, %v824_v52  ;;  %v1032_v23 = vld [vmem:[#allocation29_spill] sm:$0xff] }
 0x208   :  { %465 = vst [vmem:[#allocation7 + $0x80] sm:$0xff] %v401_v34  ;;  %466 = vst [vmem:[#allocation7 + $0x88] sm:$0xff] %v402_v30  ;;  %v385_v28 = vmul.f32 %v357_v62, %v689_v13  ;;  %v386_v37 = vmul.f32 %v357_v62, %v691_v14  ;;  %v387_v39 = vmul.f32 %v357_v62, %v694_v17  ;;  %v1033_v34 = vld [vmem:[#allocation33_spill] sm:$0xff] }
 0x209   :  { %467 = vst [vmem:[#allocation7 + $0x90] sm:$0xff] %v403_v20  ;;  %468 = vst [vmem:[#allocation7 + $0x98] sm:$0xff] %v404_v61  ;;  %v388_v36 = vmul.f32 %v357_v62, %v696_v18  ;;  %v389_v16 = vmul.f32 %v357_v62, %v708_v29  ;;  %v390_v15 = vmul.f32 %v357_v62, %v718_v38  ;;  %v372_v40 = vpop.permute.xlu0 %371  ;;  %v361_v13 = vpop.permute.xlu1 %360 }
 0x20a   :  { %469 = vst [vmem:[#allocation7 + $0xa0] sm:$0xff] %v405_v54  ;;  %470 = vst [vmem:[#allocation7 + $0xa8] sm:$0xff] %v406_v42  ;;  %v391_v32 = vmul.f32 %v357_v62, %v725_v49  ;;  %v392_v52 = vmul.f32 %v357_v62, %v737_v60  ;;  %v417_v14 = vmul.f32 %v372_v40, %v676_v0 }
 0x20b   :  { %471 = vst [vmem:[#allocation7 + $0xb0] sm:$0xff] %v407_v47  ;;  %472 = vst [vmem:[#allocation7 + $0xb8] sm:$0xff] %v408_v41  ;;  %v418_v17 = vmul.f32 %v372_v40, %v678_v1  ;;  %v419_v18 = vmul.f32 %v372_v40, %v680_v2  ;;  %v420_v29 = vmul.f32 %v372_v40, %v682_v3 }
 0x20c   :  { %449 = vst [vmem:[#allocation7] sm:$0xff] %v385_v28  ;;  %450 = vst [vmem:[#allocation7 + $0x8] sm:$0xff] %v386_v37  ;;  %v421_v38 = vmul.f32 %v372_v40, %v685_v9  ;;  %v422_v49 = vmul.f32 %v372_v40, %v700_v21  ;;  %v423_v60 = vmul.f32 %v372_v40, %v702_v22  ;;  %v1023_v22 = vld [vmem:[#allocation23_spill] sm:$0xff] }
 0x20d   :  { %451 = vst [vmem:[#allocation7 + $0x10] sm:$0xff] %v387_v39  ;;  %452 = vst [vmem:[#allocation7 + $0x18] sm:$0xff] %v388_v36  ;;  %v424_v7 = vmul.f32 %v372_v40, %v705_v25  ;;  %v393_v0 = vmul.f32 %v361_v13, %v733_v57  ;;  %v394_v1 = vmul.f32 %v361_v13, %v735_v58  ;;  %v380_v8 = vpop.permute.xlu0 %379  ;;  %v369_v57 = vpop.permute.xlu1 %368  ;;  %v1025_v58 = vld [vmem:[#allocation18_spill] sm:$0xff]  ;;  %v1036_v36 = vld [vmem:[#allocation13_spill] sm:$0xff] }
 0x20e   :  { %453 = vst [vmem:[#allocation7 + $0x20] sm:$0xff] %v389_v16  ;;  %454 = vst [vmem:[#allocation7 + $0x28] sm:$0xff] %v390_v15  ;;  %v395_v2 = vmul.f32 %v361_v13, %v740_v63  ;;  %v396_v3 = vmul.f32 %v361_v13, %v742_v4  ;;  %v397_v9 = vmul.f32 %v361_v13, %v753_v24  ;;  %v1026_v4 = vld [vmem:[#allocation20_spill] sm:$0xff]  ;;  %v1037_v15 = vld [vmem:[#allocation14_spill] sm:$0xff] }
 0x20f   :  { %455 = vst [vmem:[#allocation7 + $0x30] sm:$0xff] %v391_v32  ;;  %456 = vst [vmem:[#allocation7 + $0x38] sm:$0xff] %v392_v52  ;;  %v398_v21 = vmul.f32 %v361_v13, %v766_v46  ;;  %v399_v25 = vmul.f32 %v361_v13, %v1023_v22  ;;  %v400_v56 = vmul.f32 %v361_v13, %v1024_v48  ;;  %v1029_v46 = vld [vmem:[#allocation25_spill] sm:$0xff]  ;;  %v1041_v13 = vld [vmem:[#allocation19_spill] sm:$0xff] }
 0x210   :  { %481 = vst [vmem:[#allocation7 + $0x100] sm:$0xff] %v417_v14  ;;  %482 = vst [vmem:[#allocation7 + $0x108] sm:$0xff] %v418_v17  ;;  %v433_v63 = vmul.f32 %v380_v8, %v1025_v58  ;;  %v434_v55 = vmul.f32 %v380_v8, %v1026_v4  ;;  %v435_v50 = vmul.f32 %v380_v8, %v1027_v44  ;;  %v1040_v52 = vld [vmem:[#allocation17_spill] sm:$0xff] }
 0x211   :  { %483 = vst [vmem:[#allocation7 + $0x110] sm:$0xff] %v419_v18  ;;  %484 = vst [vmem:[#allocation7 + $0x118] sm:$0xff] %v420_v29  ;;  %v436_v24 = vmul.f32 %v380_v8, %v1028_v35  ;;  %v437_v26 = vmul.f32 %v380_v8, %v1029_v46  ;;  %v438_v12 = vmul.f32 %v380_v8, %v1030_v19  ;;  %v376_v37 = vpop.permute.xlu1 %375  ;;  %v1042_v18 = vld [vmem:[#allocation28_spill] sm:$0xff] }
 0x212   :  { %485 = vst [vmem:[#allocation7 + $0x120] sm:$0xff] %v421_v38  ;;  %486 = vst [vmem:[#allocation7 + $0x128] sm:$0xff] %v422_v49  ;;  %v439_v51 = vmul.f32 %v380_v8, %v1031_v33  ;;  %v440_v62 = vmul.f32 %v380_v8, %v1032_v23  ;;  %v409_v30 = vmul.f32 %v369_v57, %v1033_v34  ;;  %v1043_v38 = vld [vmem:[#allocation30_spill] sm:$0xff] }
 0x213   :  { %487 = vst [vmem:[#allocation7 + $0x130] sm:$0xff] %v423_v60  ;;  %488 = vst [vmem:[#allocation7 + $0x138] sm:$0xff] %v424_v7  ;;  %v410_v20 = vmul.f32 %v369_v57, %v829_v6  ;;  %v411_v61 = vmul.f32 %v369_v57, %v835_v27  ;;  %v412_v54 = vmul.f32 %v369_v57, %v838_v45  ;;  %v1034_v27 = vld [vmem:[#allocation11_spill] sm:$0xff]  ;;  %v1035_v45 = vld [vmem:[#allocation12_spill] sm:$0xff] }
 0x214   :  { %457 = vst [vmem:[#allocation7 + $0x40] sm:$0xff] %v393_v0  ;;  %458 = vst [vmem:[#allocation7 + $0x48] sm:$0xff] %v394_v1  ;;  %v413_v42 = vmul.f32 %v369_v57, %v848_v11  ;;  %v414_v47 = vmul.f32 %v369_v57, %v854_v59  ;;  %v415_v41 = vmul.f32 %v369_v57, %v860_v10  ;;  %v1038_v11 = vld [vmem:[#allocation15_spill] sm:$0xff]  ;;  %v1039_v10 = vld [vmem:[#allocation16_spill] sm:$0xff] }
 0x215   :  { %459 = vst [vmem:[#allocation7 + $0x50] sm:$0xff] %v395_v2  ;;  %460 = vst [vmem:[#allocation7 + $0x58] sm:$0xff] %v396_v3  ;;  %v416_v28 = vmul.f32 %v369_v57, %v864_v5  ;;  %v425_v6 = vmul.f32 %v376_v37, %v1034_v27  ;;  %v426_v39 = vmul.f32 %v376_v37, %v1035_v45  ;;  %v384_v17 = vpop.permute.xlu1 %383  ;;  %v1044_v60 = vld [vmem:[#allocation31_spill] sm:$0xff]  ;;  %v1045_v0 = vld [vmem:[#allocation32_spill] sm:$0xff] }
 0x216   :  { %461 = vst [vmem:[#allocation7 + $0x60] sm:$0xff] %v397_v9  ;;  %462 = vst [vmem:[#allocation7 + $0x68] sm:$0xff] %v398_v21  ;;  %v427_v16 = vmul.f32 %v376_v37, %v1036_v36  ;;  %v428_v32 = vmul.f32 %v376_v37, %v1037_v15  ;;  %v429_v59 = vmul.f32 %v376_v37, %v1038_v11  ;;  %v1046_v21 = vld [vmem:[#allocation34_spill] sm:$0xff] }
 0x217   :  { %463 = vst [vmem:[#allocation7 + $0x70] sm:$0xff] %v399_v25  ;;  %464 = vst [vmem:[#allocation7 + $0x78] sm:$0xff] %v400_v56  ;;  %v430_v5 = vmul.f32 %v376_v37, %v1039_v10  ;;  %v431_v40 = vmul.f32 %v376_v37, %v1040_v52  ;;  %v432_v14 = vmul.f32 %v376_v37, %v1041_v13 }
 0x218   :  { %497 = vst [vmem:[#allocation7 + $0x180] sm:$0xff] %v433_v63  ;;  %498 = vst [vmem:[#allocation7 + $0x188] sm:$0xff] %v434_v55  ;;  %v441_v29 = vmul.f32 %v384_v17, %v1042_v18  ;;  %v442_v49 = vmul.f32 %v384_v17, %v1043_v38  ;;  %v443_v7 = vmul.f32 %v384_v17, %v1044_v60 }
 0x219   :  { %499 = vst [vmem:[#allocation7 + $0x190] sm:$0xff] %v435_v50  ;;  %500 = vst [vmem:[#allocation7 + $0x198] sm:$0xff] %v436_v24  ;;  %v444_v1 = vmul.f32 %v384_v17, %v1045_v0  ;;  %v445_v2 = vmul.f32 %v384_v17, %v833_v53  ;;  %v446_v3 = vmul.f32 %v384_v17, %v843_v31 }
 0x21a   :  { %501 = vst [vmem:[#allocation7 + $0x1a0] sm:$0xff] %v437_v26  ;;  %502 = vst [vmem:[#allocation7 + $0x1a8] sm:$0xff] %v438_v12  ;;  %v447_v9 = vmul.f32 %v384_v17, %v850_v43  ;;  %v448_v22 = vmul.f32 %v384_v17, %v1046_v21 }
 0x21b   :  { %503 = vst [vmem:[#allocation7 + $0x1b0] sm:$0xff] %v439_v51  ;;  %504 = vst [vmem:[#allocation7 + $0x1b8] sm:$0xff] %v440_v62 }
 0x21c   :  { %473 = vst [vmem:[#allocation7 + $0xc0] sm:$0xff] %v409_v30  ;;  %474 = vst [vmem:[#allocation7 + $0xc8] sm:$0xff] %v410_v20 }
 0x21d   :  { %475 = vst [vmem:[#allocation7 + $0xd0] sm:$0xff] %v411_v61  ;;  %476 = vst [vmem:[#allocation7 + $0xd8] sm:$0xff] %v412_v54 }
 0x21e   :  { %477 = vst [vmem:[#allocation7 + $0xe0] sm:$0xff] %v413_v42  ;;  %478 = vst [vmem:[#allocation7 + $0xe8] sm:$0xff] %v414_v47 }
 0x21f   :  { %479 = vst [vmem:[#allocation7 + $0xf0] sm:$0xff] %v415_v41  ;;  %480 = vst [vmem:[#allocation7 + $0xf8] sm:$0xff] %v416_v28 }
 0x220   :  { %489 = vst [vmem:[#allocation7 + $0x140] sm:$0xff] %v425_v6  ;;  %490 = vst [vmem:[#allocation7 + $0x148] sm:$0xff] %v426_v39 }
 0x221   :  { %491 = vst [vmem:[#allocation7 + $0x150] sm:$0xff] %v427_v16  ;;  %492 = vst [vmem:[#allocation7 + $0x158] sm:$0xff] %v428_v32 }
 0x222   :  { %493 = vst [vmem:[#allocation7 + $0x160] sm:$0xff] %v429_v59  ;;  %494 = vst [vmem:[#allocation7 + $0x168] sm:$0xff] %v430_v5 }
 0x223   :  { %495 = vst [vmem:[#allocation7 + $0x170] sm:$0xff] %v431_v40  ;;  %496 = vst [vmem:[#allocation7 + $0x178] sm:$0xff] %v432_v14 }
 0x224   :  { %505 = vst [vmem:[#allocation7 + $0x1c0] sm:$0xff] %v441_v29  ;;  %506 = vst [vmem:[#allocation7 + $0x1c8] sm:$0xff] %v442_v49 }
 0x225   :  { %507 = vst [vmem:[#allocation7 + $0x1d0] sm:$0xff] %v443_v7  ;;  %508 = vst [vmem:[#allocation7 + $0x1d8] sm:$0xff] %v444_v1 }
 0x226   :  { %509 = vst [vmem:[#allocation7 + $0x1e0] sm:$0xff] %v445_v2  ;;  %510 = vst [vmem:[#allocation7 + $0x1e8] sm:$0xff] %v446_v3 }
 0x227   :  { %511 = vst [vmem:[#allocation7 + $0x1f0] sm:$0xff] %v447_v9  ;;  %512 = vst [vmem:[#allocation7 + $0x1f8] sm:$0xff] %v448_v22 }
 0x228   :  { %599 = shalt.err (!%p596_p6)
}
 0x229   :  { %s600_s28 = scalar_lea.hbm %s974_s4, 8192 }
 0x22a   :  { %p601_p7 = scmp.ne.s32.totalorder %s974_s4, %s600_s28  ;;  %p604_p8 = scmp.lt.u32.totalorder %s600_s28, %s974_s4 }
 0x22c   :  { %p606_p9 = pnand %p604_p8, %p601_p7 }
 0x22e   :  { %609 = shalt.err (!%p606_p9)
}
 0x22f   :  { %524 = dma.vmem_to_hbm [thread:$0]  %s519_s22, 8192, %s974_s4, [#allocation4], %s617_s25, %s617_s25, %s618_s26  }
 0x230   :  { %614 = dma.done.wait [#allocation4], 8192  }
 0x231   :  { %615 = vsyncadd [#allocation4], 4294959104 }
 0x232   :  { %528 = vsyncpa [#allocation3], 1 }
 0x233   :  { %529 = vsyncpa [#allocation6], 1 }
 0x234   :  { %530 = vsyncpa [#allocation4], 1 }

</bundles_post_ra>
